<compile_context>
chip_gen: v6e
topology: v6e:2x2x1
jax: 0.10.0
libtpu: 0.0.40
codegen_flags: <defaults>
</compile_context>

<pallas_src>
import jax
import jax.numpy as jnp
from jax.experimental import pallas as pl
from jax.experimental.pallas import tpu as pltpu


def _encoder_kernel(f_ref, w_ref, o_ref):
    """relu(frames @ W) for one output-time tile.

    f_ref: [B, tt, KP]  packed hop frames (compute dtype, normally bf16)
    w_ref: [KP, CP]     packed, transposed filterbank (compute dtype)
    o_ref: [B, tt, CP]  one lane-dense tile of the transposed output
    """
    b, tt, kp = f_ref.shape
    cp = o_ref.shape[-1]
    # Collapse batch into the matmul M dimension (free leading-dim reshape:
    # tt is a multiple of 128, so the (8,128) tiling is unchanged).
    f = f_ref[...].reshape(b * tt, kp)
    # Single MXU matmul with f32 accumulation; ReLU + cast fused with the store.
    y = jnp.dot(f, w_ref[...], preferred_element_type=jnp.float32)
    o_ref[...] = jnp.maximum(y, 0.0).astype(o_ref.dtype).reshape(b, tt, cp)


def _round_up(v, m):
    return -(-v // m) * m


def _vmem_capacity_bytes():
    try:
        return int(pltpu.get_tpu_info().vmem_capacity_bytes)
    except Exception:
        return 64 << 20  # conservative fallback: smallest per-core VMEM (v7x)


def _choose_tile_rows(requested_rows, r_total, per_row_bytes, budget, min_steps):
    # Lane-friendly multiple of 128 rows, no larger than needed.
    tt = max(128, min(_round_up(max(requested_rows, 1), 128),
                      _round_up(r_total, 128)))
    # Cap so the 1-D grid has >= min_steps steps when the input allows it:
    # v7x only splits the grid across its two TensorCores if there are >= 2
    # steps, and DMA/compute overlap needs a few more.
    cap = max(128, _round_up(pl.cdiv(r_total, min_steps), 128))
    tt = min(tt, cap)
    # Shrink until the double-buffered working set fits the per-chip budget.
    while tt > 128 and tt * per_row_bytes > budget:
        tt = max(128, tt // 2)
    return tt


def encoder_forward(x, weight, *, kernel_size, t_tile=4096,
                    compute_dtype=jnp.bfloat16, out_dtype=None,
                    min_grid_steps=8):
    """Conv-TasNet encoder forward.

    x:      [B, T] float waveform
    weight: [C, 1, K] == nn.Conv1d(1, C, K, stride=K//2, bias=False).weight
    returns [B, T_out, C] == relu(conv1d(x)).transpose(2, 1),
            T_out = (T - K) // (K // 2) + 1

    compute_dtype: dtype frames/filterbank are fed to the MXU in (accumulation
                   is always float32).
    out_dtype:     output dtype (default float32; bfloat16 halves HBM writes).
    """
    assert x.ndim == 2 and weight.ndim == 3 and weight.shape[1] == 1
    assert weight.shape[2] == kernel_size and kernel_size >= 2
    stride = kernel_size // 2
    b, t = x.shape
    c = weight.shape[0]
    assert t >= kernel_size, "input shorter than the filter"
    t_out = (t - kernel_size) // stride + 1

    compute_dtype = jnp.dtype(compute_dtype)
    out_dtype = jnp.dtype(out_dtype) if out_dtype is not None else jnp.dtype(jnp.float32)

    # Frame span: ceil(K/s) hops of length s cover the K filter taps. If K is odd
    # the frame spans (kp - K) extra samples which hit ZERO-padded weight columns
    # (added explicitly below), so they contribute nothing.
    n_chunks = -(-kernel_size // stride)
    kp = n_chunks * stride
    assert kp >= kernel_size

    # Lane packing: when C < 128 and divides 128, pack `group` consecutive output
    # frames into one 128-lane output row (block-diagonal weight) so the output
    # stores are never masked. The packed buffer is bit-identical in memory to the
    # row-major [B, T_out_pad, C] tensor, so the final reshape is free.
    group = 128 // c if (c < 128 and 128 % c == 0) else 1
    kp_p = group * kp
    c_p = group * c

    r_total = pl.cdiv(t_out, group)          # packed output rows actually needed

    # --- per-chip tile / VMEM budgeting --------------------------------------
    in_it = compute_dtype.itemsize
    out_it = out_dtype.itemsize
    vmem_cap = _vmem_capacity_bytes()
    budget = min(max(vmem_cap // 4, 12 << 20), 48 << 20)   # ~16 MiB v7x, ~32 MiB v5e/v6e
    # VMEM footprint per packed row (lane-padded), double-buffered in/out plus the
    # in-kernel f32 matmul result / ReLU temporary.
    per_row = (2 * b * max(kp_p, 128) * in_it      # frames (2 buffers)
               + 2 * b * max(c_p, 128) * out_it    # output (2 buffers)
               + 2 * b * max(c_p, 128) * 4)        # f32 dot result + relu temp
    tt = _choose_tile_rows(pl.cdiv(t_tile, group), r_total, per_row, budget,
                           min_grid_steps)
    nt = pl.cdiv(r_total, tt)
    r_pad = nt * tt
    t_out_pad = r_pad * group

    # --- build framed input & packed filterbank in the wrapper ----------------
    l_need = (t_out_pad + n_chunks - 1) * stride
    xf = x[:, :l_need] if t >= l_need else jnp.pad(x, ((0, 0), (0, l_need - t)))
    # frames[b, t, :] = x[b, t*s : t*s + kp]  via n_chunks contiguous reshapes.
    frames = jnp.concatenate(
        [xf[:, j * stride:(j + t_out_pad) * stride].reshape(b, t_out_pad, stride)
         for j in range(n_chunks)],
        axis=-1)                                           # [B, T_out_pad, kp]
    # Pack `group` consecutive frames per row (pure row-major reshape: free).
    frames = frames.reshape(b, r_pad, kp_p).astype(compute_dtype)

    w2d = weight.reshape(c, kernel_size)
    if kp > kernel_size:                      # odd K: zero-pad the extra taps
        w2d = jnp.pad(w2d, ((0, 0), (0, kp - kernel_size)))
    wt = w2d.T                                # [kp, C]
    if group > 1:                             # block-diagonal packed filterbank
        pw = jnp.zeros((kp_p, c_p), wt.dtype)
        for g in range(group):
            pw = pw.at[g * kp:(g + 1) * kp, g * c:(g + 1) * c].set(wt)
        wt = pw
    wt = wt.astype(compute_dtype)

    # --- pallas_call -----------------------------------------------------------
    workset = tt * per_row + 2 * kp_p * max(c_p, 128) * in_it
    vmem_limit = int(min(max(2 * workset + (4 << 20), 32 << 20),
                         max(32 << 20, 3 * vmem_cap // 4)))

    cost = pl.CostEstimate(
        flops=2 * b * r_pad * kp_p * c_p,
        transcendentals=0,
        bytes_accessed=int(b * r_pad * kp_p * in_it
                           + kp_p * c_p * in_it
                           + b * r_pad * c_p * out_it),
    )

    out = pl.pallas_call(
        _encoder_kernel,
        out_shape=jax.ShapeDtypeStruct((b, r_pad, c_p), out_dtype),
        grid_spec=pltpu.PrefetchScalarGridSpec(
            num_scalar_prefetch=0,
            grid=(nt,),
            in_specs=[
                pl.BlockSpec((b, tt, kp_p), lambda i: (0, i, 0)),
                pl.BlockSpec((kp_p, c_p), lambda i: (0, 0)),
            ],
            out_specs=pl.BlockSpec((b, tt, c_p), lambda i: (0, i, 0)),
        ),
        compiler_params=pltpu.CompilerParams(
            dimension_semantics=("parallel",),   # time tiles shard across TCs
            vmem_limit_bytes=vmem_limit,
        ),
        cost_estimate=cost,
    )(frames, wt)

    # Unpack to [B, T_out_pad, C] (same row-major buffer) and drop the pad tail.
    out = out.reshape(b, t_out_pad, c)
    return out if t_out_pad == t_out else out[:, :t_out, :]


def encoder_reference(x, weight, *, kernel_size):
    """Pure-JAX reference matching the PyTorch forward (relu(conv1d).transpose)."""
    stride = kernel_size // 2
    b, t = x.shape
    t_out = (t - kernel_size) // stride + 1
    w2d = weight.reshape(weight.shape[0], kernel_size)       # [C, K]
    frames = jnp.stack(
        [x[:, k:k + (t_out - 1) * stride + 1:stride] for k in range(kernel_size)],
        axis=-1,
    )                                                         # [B, T_out, K]
    y = jnp.einsum("btk,ck->btc", frames, w2d,
                   precision=jax.lax.Precision.HIGHEST)
    return jnp.maximum(y, 0.0)                                # already [B, T_out, C]


if __name__ == "__main__":
    key = jax.random.PRNGKey(0)
    k1, k2, k3, k4 = jax.random.split(key, 4)
    B = 2

    # --- Config 1: module defaults (kernel_size=2, out_channels=64), ragged T.
    #     Exercises the lane-packed output path (2 frames per 128-lane row). ---
    K1, C1, T1 = 2, 64, 1000                        # stride 1 -> T_out = 999
    x1 = jax.random.normal(k1, (B, T1), dtype=jnp.float32)
    w1 = jax.random.normal(k2, (C1, 1, K1), dtype=jnp.float32) * 0.1
    ref1 = encoder_reference(x1, w1, kernel_size=K1)

    out1 = jax.block_until_ready(encoder_forward(x1, w1, kernel_size=K1))
    assert out1.shape == ref1.shape == (B, T1 - 1, C1)
    assert jnp.allclose(out1, ref1, atol=2e-2, rtol=2e-2), "config-1 (bf16) mismatch"

    out1_f32 = jax.block_until_ready(
        encoder_forward(x1, w1, kernel_size=K1, compute_dtype=jnp.float32))
    assert jnp.allclose(out1_f32, ref1, atol=1e-2, rtol=1e-2), "config-1 (f32) mismatch"

    # --- Config 2: realistic Conv-TasNet filterbank (K=16, C=256):
    #     single bf16 MXU matmul per tile, fully lane-dense output stores. ---
    K2, C2, T2 = 16, 256, 4104                      # stride 8 -> T_out = 512
    x2 = jax.random.normal(k3, (B, T2), dtype=jnp.float32)
    w2 = jax.random.normal(k4, (C2, 1, K2), dtype=jnp.float32) * 0.1
    ref2 = encoder_reference(x2, w2, kernel_size=K2)

    out2 = jax.block_until_ready(encoder_forward(x2, w2, kernel_size=K2))
    assert out2.shape == ref2.shape == (B, 512, C2)
    # Tolerance covers bf16 operand rounding (accumulation stays f32).
    assert jnp.allclose(out2, ref2, atol=5e-2, rtol=5e-2), "config-2 mismatch"

    # --- bfloat16 output variant (halves HBM write traffic on the write-bound op).
    out2_bf16 = jax.block_until_ready(
        encoder_forward(x2, w2, kernel_size=K2, out_dtype=jnp.bfloat16))
    assert out2_bf16.dtype == jnp.bfloat16
    assert jnp.allclose(out2_bf16.astype(jnp.float32), ref2, atol=1e-1, rtol=1e-1), \
        "bf16 output mismatch"

    print("KERNEL_OK")
</pallas_src>

<mosaic_0001>
module attributes {stable_mosaic.version = 11 : i64} {
  func.func @_encoder_kernel(%arg0: i32, %arg1: memref<2x128x4xbf16, #tpu.memory_space<vmem>>, %arg2: memref<4x128xbf16, #tpu.memory_space<vmem>>, %arg3: memref<2x128x128xf32, #tpu.memory_space<vmem>>) attributes {dimension_semantics = [#tpu.dimension_semantics<parallel>], iteration_bounds = array<i64: 4>, scalar_prefetch = 0 : i64, scratch_operands = 0 : i64, tpu.core_type = #tpu.core_type<tc>, window_params = [{transform_indices = @transform_0, window_bounds = array<i64: 2, 128, 4>}, {pipeline_mode = #tpu.pipeline_mode<synchronous>, transform_indices = @transform_1, window_bounds = array<i64: 4, 128>}, {transform_indices = @transform_2, window_bounds = array<i64: 2, 128, 128>}]} {
    %c0 = arith.constant 0 : index
    %c0_0 = arith.constant 0 : index
    %c0_1 = arith.constant 0 : index
    %0 = vector.load %arg1[%c0, %c0_0, %c0_1] : memref<2x128x4xbf16, #tpu.memory_space<vmem>>, vector<2x128x4xbf16>
    %1 = vector.shape_cast %0 : vector<2x128x4xbf16> to vector<256x4xbf16>
    %c0_2 = arith.constant 0 : index
    %c0_3 = arith.constant 0 : index
    %2 = vector.load %arg2[%c0_2, %c0_3] : memref<4x128xbf16, #tpu.memory_space<vmem>>, vector<4x128xbf16>
    %cst = arith.constant dense<0.000000e+00> : vector<256x128xf32>
    %3 = tpu.matmul %1, %2, %cst {dimension_numbers = #tpu.dot_dimension_numbers<[1], [0], [0], [1], [0, 0, 1, 1], [], []>} : vector<256x4xbf16>, vector<4x128xbf16>, vector<256x128xf32> -> vector<256x128xf32>
    %cst_4 = arith.constant 0.000000e+00 : f32
    %4 = vector.broadcast %cst_4 : f32 to vector<256x128xf32>
    %5 = arith.maximumf %3, %4 : vector<256x128xf32>
    %6 = vector.shape_cast %5 : vector<256x128xf32> to vector<2x128x128xf32>
    %c0_5 = arith.constant 0 : index
    %c0_6 = arith.constant 0 : index
    %c0_7 = arith.constant 0 : index
    %7 = vector.load %arg3[%c0_5, %c0_6, %c0_7] : memref<2x128x128xf32, #tpu.memory_space<vmem>>, vector<2x128x128xf32>
    tpu.vector_store %arg3[%c0_5, %c0_6, %c0_7], %6 {strides = array<i32>} : memref<2x128x128xf32, #tpu.memory_space<vmem>>, vector<2x128x128xf32>,
    return
  }
  func.func @transform_0(%arg0: i32) -> (i32, i32, i32) {
    %c0_i32 = arith.constant 0 : i32
    %c0_i32_0 = arith.constant 0 : i32
    %c0_i32_1 = arith.constant 0 : i32
    return %c0_i32, %arg0, %c0_i32_0 : i32, i32, i32
  }
  func.func @transform_1(%arg0: i32) -> (i32, i32) {
    %c0_i32 = arith.constant 0 : i32
    %c0_i32_0 = arith.constant 0 : i32
    %c0_i32_1 = arith.constant 0 : i32
    return %c0_i32, %c0_i32_0 : i32, i32
  }
  func.func @transform_2(%arg0: i32) -> (i32, i32, i32) {
    %c0_i32 = arith.constant 0 : i32
    %c0_i32_0 = arith.constant 0 : i32
    %c0_i32_1 = arith.constant 0 : i32
    return %c0_i32, %arg0, %c0_i32_0 : i32, i32, i32
  }
}

</mosaic_0001>

<bundles_post_ra>
// kernel: tpu_custom_call.1
= control target key start
LH: loop header
LB: loop body
LE: loop exit
PB: predicated region body
PF: predicated region fallthrough
CT: control target
= control target key end

     0   :  { %7 = vsyncpa [#allocation4], 0  ;;  %s1206_s0 = inlined_call_operand.vmem [shape: bf16[2,512,4], index: 0, kind: input, shape index: {}]   ;;  %s1207_s1 = inlined_call_operand.vmem [shape: bf16[4,128], index: 1, kind: input, shape index: {}]   ;;  %s1208_s2 = inlined_call_operand.hbm [shape: f32[2,512,128], index: 2, kind: output, shape index: {}]  }
   0x1   :  { %9 = vsyncpa [#allocation4 + $0x1], 0  ;;  %s1038_s9 = smov 0   ;;  %s1040_s10 = smov 0  }
   0x2   :  { %s1042_s11 = smov 0   ;;  %s1044_s12 = smov 0  }
   0x3 LB: > { %s808_s13 = sadd.s32 4294967295, %s1014_s12   ;;  %s809_s14 = sadd.s32 4294967294, %s1014_s12   ;;  %s1014_s12 = sphi %s1044_s12, %s1214_s12   ;;  %s1010_s11 = sphi %s1042_s11, %s1213_s11   ;;  %s1006_s10 = sphi %s1040_s10, %s1212_s10   ;;  %s1002_s9 = sphi %s1038_s9, %s1211_s9  }
   0x4   : > { %s1061_s15 = sadd.s32 1, %s1014_s12   ;;  %s22_s16 = sadd.s32 1, %s1010_s11 }
   0x5   : > { %s19_s17 = ssub.s32 %s1014_s12, %s1061_s15  ;;  %p29_p0 = scmp.ne.s32.totalorder %s1010_s11, %s1006_s10 }
   0x6   : > { %p20_p1 = scmp.eq.s32.totalorder %s19_s17, 0  ;;  %p30_p2 = scmp.eq.s32.totalorder %s1014_s12, 0 }
   0x7   : > { %p80_p3 = scmp.eq.s32.totalorder %s808_s13, 3  ;;  %p85_p4 = scmp.ne.s32.totalorder %s1006_s10, %s1002_s9 }
   0x8   : > { %s1074_s18 = scalar_select %p20_p1, %s1010_s11, %s22_s16  }
   0x9   : > { %p31_p5 = por %p30_p2, %p29_p0  ;;  %p1076_p6 = por %p80_p3, %p29_p0 }
   0xa   : > { %p86_p7 = scmp.eq.s32.totalorder %s809_s14, 3  ;;  %p811_p9 = scmp.ge.s32.totalorder %s1014_s12, 4 }
   0xc   : > { %p1080_p8 = por %p86_p7, %p85_p4  ;;  %105 = sbr.rel (%p811_p9) target bundleno = 29 (0x1d), region = 20 }
  0x11   : > { %108 = sbr.rel (!%p31_p5) target bundleno = 29 (0x1d), region = 24  ;;  %s110_s21 = sand.u32 (%p31_p5), 1, %s1010_s11  }
  0x12   : > { %s855_s22 = sshll.u32 (%p31_p5), %s1014_s12, 6  ;;  %s812_s23 = sshll.u32 (%p31_p5), %s110_s21, 7 }
  0x13   : > { %s1090_s26 = scalar_lea.vmem (%p31_p5), %s1206_s0, %s855_s22  ;;  %s112_s27 = scalar_lea.vmem (%p31_p5), [#allocation2], %s812_s23 }
  0x14   : > { %v132_v0 = vld [vmem:[%s1090_s26] sm:$0xff] (%p31_p5)   ;;  %v136_v1 = vld [vmem:[%s1090_s26 + $0x8] sm:$0xff] (%p31_p5)   ;;  %v140_v2 = vld [vmem:[%s1090_s26 + $0x10] sm:$0xff] (%p31_p5)  }
  0x15   : > { %133 = vst [vmem:[%s112_s27] sm:$0xff] (%p31_p5), %v132_v0   ;;  %137 = vst [vmem:[%s112_s27 + $0x8] sm:$0xff] (%p31_p5), %v136_v1   ;;  %v144_v3 = vld [vmem:[%s1090_s26 + $0x18] sm:$0xff] (%p31_p5)   ;;  %v148_v4 = vld [vmem:[%s1090_s26 + $0x20] sm:$0xff] (%p31_p5)  }
  0x16   : > { %141 = vst [vmem:[%s112_s27 + $0x10] sm:$0xff] %v140_v2   ;;  %v152_v5 = vld [vmem:[%s1090_s26 + $0x28] sm:$0xff]   ;;  %145 = vst [vmem:[%s112_s27 + $0x18] sm:$0xff] %v144_v3   ;;  %v156_v6 = vld [vmem:[%s1090_s26 + $0x30] sm:$0xff]  }
  0x17   : > { %149 = vst [vmem:[%s112_s27 + $0x20] sm:$0xff] %v148_v4   ;;  %153 = vst [vmem:[%s112_s27 + $0x28] sm:$0xff] %v152_v5   ;;  %v160_v7 = vld [vmem:[%s1090_s26 + $0x38] sm:$0xff]   ;;  %v164_v8 = vld [vmem:[%s1090_s26 + $0x100] sm:$0xff]  }
  0x18   : > { %157 = vst [vmem:[%s112_s27 + $0x30] sm:$0xff] %v156_v6   ;;  %161 = vst [vmem:[%s112_s27 + $0x38] sm:$0xff] %v160_v7   ;;  %v168_v9 = vld [vmem:[%s1090_s26 + $0x108] sm:$0xff]   ;;  %v172_v10 = vld [vmem:[%s1090_s26 + $0x110] sm:$0xff]  }
  0x19   : > { %165 = vst [vmem:[%s112_s27 + $0x40] sm:$0xff] %v164_v8   ;;  %v176_v11 = vld [vmem:[%s1090_s26 + $0x118] sm:$0xff]   ;;  %169 = vst [vmem:[%s112_s27 + $0x48] sm:$0xff] %v168_v9   ;;  %v180_v12 = vld [vmem:[%s1090_s26 + $0x120] sm:$0xff]  }
  0x1a   : > { %173 = vst [vmem:[%s112_s27 + $0x50] sm:$0xff] %v172_v10   ;;  %177 = vst [vmem:[%s112_s27 + $0x58] sm:$0xff] %v176_v11   ;;  %v184_v13 = vld [vmem:[%s1090_s26 + $0x128] sm:$0xff]   ;;  %v188_v14 = vld [vmem:[%s1090_s26 + $0x130] sm:$0xff]  }
  0x1b   : > { %181 = vst [vmem:[%s112_s27 + $0x60] sm:$0xff] %v180_v12   ;;  %185 = vst [vmem:[%s112_s27 + $0x68] sm:$0xff] %v184_v13   ;;  %v192_v15 = vld [vmem:[%s1090_s26 + $0x138] sm:$0xff]  }
  0x1c   : > { %189 = vst [vmem:[%s112_s27 + $0x70] sm:$0xff] %v188_v14   ;;  %193 = vst [vmem:[%s112_s27 + $0x78] sm:$0xff] %v192_v15  }
  0x1d PF: > { %p815_p10 = scmp.ge.s32.totalorder %s1014_s12, 1  ;;  %p282_p11 = scmp.lt.s32.totalorder %s1014_s12, 5 }
  0x1f   : > { %p283_p12 = pnand %p815_p10, %p282_p11 }
  0x20   : > { %s1114_s30 = sand.u32 (!%p283_p12), 1, %s1006_s10  }
  0x21   : > { %286 = sbr.rel (%p283_p12) target bundleno = 278 (0x116), region = 65  ;;  %s816_s3 = sshll.u32 (!%p283_p12), %s1114_s30, 7 }
  0x22   : > { %s291_s4 = scalar_lea.vmem (!%p283_p12), [#allocation2], %s816_s3  ;;  %s817_s5 = sshll.u32 (!%p283_p12), %s1114_s30, 8 }
  0x23   : > { %s1134_s6 = scalar_lea.vmem (!%p283_p12), [#allocation3], %s817_s5  ;;  %s705_s7 = scalar_lea.sflag (!%p283_p12), [#allocation4], %s1114_s30 }
  0x26   : > { %v345_v16 = vld [vmem:[%s1207_s1] sm:$0x3]  ;;  %vm475_vm0 = vcmask 1041408   ;;  %vm426_vm1 = vcmask 31744   ;;  %v966_v20 = vld [vmem:[%s291_s4 + $0x8] sm:$0xff]   ;;  %v968_v22 = vld [vmem:[%s291_s4 + $0x10] sm:$0xff]  }
  0x27   : > { %910 = vmatprep.subr.msk.bf16.mxu0 %vm475_vm0, %v345_v16  ;;  %911 = vmatprep.subr.msk.bf16.mxu1 %vm475_vm0, %v345_v16  ;;  %v477_v17 = vsel %vm475_vm0, %v345_v16, 0  ;;  %v964_v18 = vld [vmem:[%s291_s4] sm:$0xff]   ;;  %v967_v21 = vld [vmem:[%s291_s4 + $0x48] sm:$0xff]   ;;  %v969_v23 = vld [vmem:[%s291_s4 + $0x50] sm:$0xff]  }
  0x28   : > { %875 = vmatpush3.bf16.msra.mxu0 %v477_v17  ;;  %909 = vmatpush3.bf16.msra.mxu1 %v477_v17  ;;  %v965_v19 = vld [vmem:[%s291_s4 + $0x40] sm:$0xff]   ;;  %v970_v24 = vld [vmem:[%s291_s4 + $0x18] sm:$0xff]   ;;  %v974_v28 = vld [vmem:[%s291_s4 + $0x28] sm:$0xff]  }
  0x29   : > { %876 = vmatprep.mubr.msk.bf16.mxu0 %vm426_vm1, %v964_v18  ;;  %892 = vmatprep.mubr.msk.bf16.mxu1 %vm426_vm1, %v965_v19  ;;  %v971_v25 = vld [vmem:[%s291_s4 + $0x58] sm:$0xff]   ;;  %v972_v26 = vld [vmem:[%s291_s4 + $0x20] sm:$0xff]   ;;  %v975_v29 = vld [vmem:[%s291_s4 + $0x68] sm:$0xff]  }
  0x2a   : > { %v973_v27 = vld [vmem:[%s291_s4 + $0x60] sm:$0xff]   ;;  %v976_v30 = vld [vmem:[%s291_s4 + $0x30] sm:$0xff]   ;;  %v978_v32 = vld [vmem:[%s291_s4 + $0x38] sm:$0xff]  }
  0x2b   : > { %877 = vmatmul.mubr.msk.bf16.vlgmr.msra.gmra.mxu0 %vm426_vm1, %v966_v20  ;;  %893 = vmatmul.mubr.msk.bf16.vlgmr.msra.gmra.mxu1 %vm426_vm1, %v967_v21  ;;  %v977_v31 = vld [vmem:[%s291_s4 + $0x70] sm:$0xff]   ;;  %v979_v33 = vld [vmem:[%s291_s4 + $0x78] sm:$0xff]  }
  0x2c   : > { %880 = vmatprep.mubr.msk.bf16.mxu0 %vm426_vm1, %v968_v22  ;;  %896 = vmatprep.mubr.msk.bf16.mxu1 %vm426_vm1, %v969_v23 }
  0x33   : > { %881 = vmatmul.mubr.msk.bf16.gmra.mxu0 %vm426_vm1, %v970_v24  ;;  %897 = vmatmul.mubr.msk.bf16.gmra.mxu1 %vm426_vm1, %v971_v25 }
  0x34   : > { %884 = vmatprep.mubr.msk.bf16.mxu0 %vm426_vm1, %v972_v26  ;;  %900 = vmatprep.mubr.msk.bf16.mxu1 %vm426_vm1, %v973_v27 }
  0x3b   : > { %885 = vmatmul.mubr.msk.bf16.gmra.mxu0 %vm426_vm1, %v974_v28  ;;  %901 = vmatmul.mubr.msk.bf16.gmra.mxu1 %vm426_vm1, %v975_v29 }
  0x3c   : > { %888 = vmatprep.mubr.msk.bf16.mxu0 %vm426_vm1, %v976_v30  ;;  %904 = vmatprep.mubr.msk.bf16.mxu1 %vm426_vm1, %v977_v31 }
  0x43   : > { %889 = vmatmul.mubr.msk.bf16.gmra.mxu0 %vm426_vm1, %v978_v32  ;;  %905 = vmatmul.mubr.msk.bf16.gmra.mxu1 %vm426_vm1, %v979_v33 }
  0xeb   : > { %v878_v34 = vpop.f32.mrf.mxu0  ;;  %v894_v36 = vpop.f32.mrf.mxu1 }
  0xec   : > { %v642_v35 = vmax.f32 %v878_v34, 0.0  ;;  %v658_v37 = vmax.f32 %v894_v36, 0.0 }
  0xed   : > { %v513_v38 = vpop.f32.mrf.mxu0  ;;  %v577_v40 = vpop.f32.mrf.mxu1 }
  0xee   : > { %674 = vst [vmem:[%s1134_s6 + $0x10] sm:$0xff] %v642_v35  ;;  %v640_v39 = vmax.f32 %v513_v38, 0.0  ;;  %690 = vst [vmem:[%s1134_s6 + $0x90] sm:$0xff] %v658_v37  ;;  %v656_v41 = vmax.f32 %v577_v40, 0.0 }
  0xef   : > { %v879_v42 = vpop.f32.mrf.mxu0  ;;  %v895_v44 = vpop.f32.mrf.mxu1 }
  0xf0   : > { %672 = vst [vmem:[%s1134_s6] sm:$0xff] %v640_v39  ;;  %v643_v43 = vmax.f32 %v879_v42, 0.0  ;;  %688 = vst [vmem:[%s1134_s6 + $0x80] sm:$0xff] %v656_v41  ;;  %v659_v45 = vmax.f32 %v895_v44, 0.0 }
  0xf1   : > { %v516_v46 = vpop.f32.mrf.mxu0  ;;  %v580_v48 = vpop.f32.mrf.mxu1 }
  0xf2   : > { %675 = vst [vmem:[%s1134_s6 + $0x18] sm:$0xff] %v643_v43  ;;  %v641_v47 = vmax.f32 %v516_v46, 0.0  ;;  %691 = vst [vmem:[%s1134_s6 + $0x98] sm:$0xff] %v659_v45  ;;  %v657_v49 = vmax.f32 %v580_v48, 0.0 }
  0xf3   : > { %v882_v50 = vpop.f32.mrf.mxu0  ;;  %v898_v52 = vpop.f32.mrf.mxu1 }
  0xf4   : > { %673 = vst [vmem:[%s1134_s6 + $0x8] sm:$0xff] %v641_v47  ;;  %v646_v51 = vmax.f32 %v882_v50, 0.0  ;;  %689 = vst [vmem:[%s1134_s6 + $0x88] sm:$0xff] %v657_v49  ;;  %v662_v53 = vmax.f32 %v898_v52, 0.0 }
  0xf5   : > { %v529_v54 = vpop.f32.mrf.mxu0  ;;  %v593_v56 = vpop.f32.mrf.mxu1 }
  0xf6   : > { %678 = vst [vmem:[%s1134_s6 + $0x30] sm:$0xff] %v646_v51  ;;  %v644_v55 = vmax.f32 %v529_v54, 0.0  ;;  %694 = vst [vmem:[%s1134_s6 + $0xb0] sm:$0xff] %v662_v53  ;;  %v660_v57 = vmax.f32 %v593_v56, 0.0 }
  0xf7   : > { %v883_v58 = vpop.f32.mrf.mxu0  ;;  %v899_v60 = vpop.f32.mrf.mxu1 }
  0xf8   : > { %676 = vst [vmem:[%s1134_s6 + $0x20] sm:$0xff] %v644_v55  ;;  %v647_v59 = vmax.f32 %v883_v58, 0.0  ;;  %692 = vst [vmem:[%s1134_s6 + $0xa0] sm:$0xff] %v660_v57  ;;  %v663_v61 = vmax.f32 %v899_v60, 0.0 }
  0xf9   : > { %v532_v62 = vpop.f32.mrf.mxu0  ;;  %v596_v0 = vpop.f32.mrf.mxu1 }
  0xfa   : > { %679 = vst [vmem:[%s1134_s6 + $0x38] sm:$0xff] %v647_v59  ;;  %v645_v63 = vmax.f32 %v532_v62, 0.0  ;;  %695 = vst [vmem:[%s1134_s6 + $0xb8] sm:$0xff] %v663_v61  ;;  %v661_v1 = vmax.f32 %v596_v0, 0.0 }
  0xfb   : > { %v886_v2 = vpop.f32.mrf.mxu0  ;;  %v902_v4 = vpop.f32.mrf.mxu1 }
  0xfc   : > { %677 = vst [vmem:[%s1134_s6 + $0x28] sm:$0xff] %v645_v63  ;;  %v650_v3 = vmax.f32 %v886_v2, 0.0  ;;  %693 = vst [vmem:[%s1134_s6 + $0xa8] sm:$0xff] %v661_v1  ;;  %v666_v5 = vmax.f32 %v902_v4, 0.0 }
  0xfd   : > { %v545_v6 = vpop.f32.mrf.mxu0  ;;  %v609_v8 = vpop.f32.mrf.mxu1 }
  0xfe   : > { %682 = vst [vmem:[%s1134_s6 + $0x50] sm:$0xff] %v650_v3  ;;  %v648_v7 = vmax.f32 %v545_v6, 0.0  ;;  %698 = vst [vmem:[%s1134_s6 + $0xd0] sm:$0xff] %v666_v5  ;;  %v664_v9 = vmax.f32 %v609_v8, 0.0 }
  0xff   : > { %v887_v10 = vpop.f32.mrf.mxu0  ;;  %v903_v12 = vpop.f32.mrf.mxu1 }
 0x100   : > { %680 = vst [vmem:[%s1134_s6 + $0x40] sm:$0xff] %v648_v7  ;;  %v651_v11 = vmax.f32 %v887_v10, 0.0  ;;  %696 = vst [vmem:[%s1134_s6 + $0xc0] sm:$0xff] %v664_v9  ;;  %v667_v13 = vmax.f32 %v903_v12, 0.0 }
 0x101   : > { %v548_v14 = vpop.f32.mrf.mxu0  ;;  %v612_v16 = vpop.f32.mrf.mxu1 }
 0x102   : > { %683 = vst [vmem:[%s1134_s6 + $0x58] sm:$0xff] %v651_v11  ;;  %v649_v15 = vmax.f32 %v548_v14, 0.0  ;;  %699 = vst [vmem:[%s1134_s6 + $0xd8] sm:$0xff] %v667_v13  ;;  %v665_v17 = vmax.f32 %v612_v16, 0.0 }
 0x103   : > { %v890_v18 = vpop.f32.mrf.mxu0  ;;  %v906_v20 = vpop.f32.mrf.mxu1 }
 0x104   : > { %681 = vst [vmem:[%s1134_s6 + $0x48] sm:$0xff] %v649_v15  ;;  %v654_v19 = vmax.f32 %v890_v18, 0.0  ;;  %697 = vst [vmem:[%s1134_s6 + $0xc8] sm:$0xff] %v665_v17  ;;  %v670_v21 = vmax.f32 %v906_v20, 0.0 }
 0x105   : > { %v561_v22 = vpop.f32.mrf.mxu0  ;;  %v625_v24 = vpop.f32.mrf.mxu1 }
 0x106   : > { %686 = vst [vmem:[%s1134_s6 + $0x70] sm:$0xff] %v654_v19  ;;  %v652_v23 = vmax.f32 %v561_v22, 0.0  ;;  %702 = vst [vmem:[%s1134_s6 + $0xf0] sm:$0xff] %v670_v21  ;;  %v668_v25 = vmax.f32 %v625_v24, 0.0 }
 0x107   : > { %v891_v26 = vpop.f32.mrf.mxu0  ;;  %v907_v28 = vpop.f32.mrf.mxu1 }
 0x108   : > { %684 = vst [vmem:[%s1134_s6 + $0x60] sm:$0xff] %v652_v23  ;;  %v655_v27 = vmax.f32 %v891_v26, 0.0  ;;  %700 = vst [vmem:[%s1134_s6 + $0xe0] sm:$0xff] %v668_v25  ;;  %v671_v29 = vmax.f32 %v907_v28, 0.0 }
 0x109   : > { %v564_v30 = vpop.f32.mrf.mxu0  ;;  %v628_v32 = vpop.f32.mrf.mxu1 }
 0x10a   : > { %687 = vst [vmem:[%s1134_s6 + $0x78] sm:$0xff] %v655_v27  ;;  %v653_v31 = vmax.f32 %v564_v30, 0.0  ;;  %703 = vst [vmem:[%s1134_s6 + $0xf8] sm:$0xff] %v671_v29  ;;  %v669_v33 = vmax.f32 %v628_v32, 0.0 }
 0x10c   : > { %685 = vst [vmem:[%s1134_s6 + $0x68] sm:$0xff] %v653_v31  ;;  %701 = vst [vmem:[%s1134_s6 + $0xe8] sm:$0xff] %v669_v33 }
 0x10d   : > { %s856_s8 = sshll.u32 %s808_s13, 11  ;;  %s728_s14 = sshll.u32 %s1134_s6, 4  ;;  %s729_s14 = int_to_ptr.vmem [resolvable:$true] %s728_s14 }
 0x10e   : > { %s717_s21 = scalar_lea.hbm %s1208_s2, %s856_s8  ;;  %s1016_s22 = smov 2048  }
 0x10f   : > { %912 = sst [smem:[#allocation6]] (%p1076_p6), %s1016_s22  ;;  %s1017_s23 = smov 8192  }
 0x110   : > { %913 = sst [smem:[#allocation6 + $0x1]] (%p1076_p6), %s1017_s23  ;;  %s1018_s24 = smov 16  }
 0x111   : > { %914 = sst [smem:[#allocation6 + $0x2]] (%p1076_p6), %s1018_s24  ;;  %s1019_s25 = smov 128  }
 0x112   : > { %915 = sst [smem:[#allocation6 + $0x3]] (%p1076_p6), %s1019_s25  ;;  %s1020_s13 = smov 8  }
 0x113   : > { %916 = sst [smem:[#allocation6 + $0x4]] (%p1076_p6), %s1019_s25  ;;  %s1021_s26 = smov 131072  }
 0x114   : > { %917 = sst [smem:[#allocation6 + $0x5]] (%p1076_p6), %s1020_s13  ;;  %s1022_s27 = smov 0  }
 0x115   : > { %918 = dma.general (%p1076_p6), %s729_s14, 4096, %s717_s21, %s705_s7, %s1021_s26, [#allocation6], %s1022_s27, 0  }
 0x116 PF: > { %p924_p13 = scmp.ge.s32.totalorder %s1014_s12, 2  ;;  %s756_s28 = sand.u32 1, %s1002_s9  }
 0x117   : > { %s757_s29 = scalar_lea.sflag [#allocation4], %s756_s28 }
 0x118   : > { %p921_p0 = pnand %p924_p13, %p1080_p8 }
 0x11a   : > { %p922_p1 = pneg %p921_p0 }
 0x11c   : > { %997 = dma.done.wait (%p922_p1), %s757_s29, 4096  }
 0x11d   : > { %999 = vsyncadd (%p922_p1), %s757_s29, 4294963200  ;;  %p12_p2 = scmp.ge.s32.totalorder %s1061_s15, 6   ;;  %s1211_s9 = smov %s1006_s10 }
 0x11e   : > { %s1212_s10 = smov %s1010_s11  ;;  %s1213_s11 = smov %s1074_s18 }
 0x11f   : > { %s1214_s12 = smov %s1061_s15  ;;  %14 = sbr.rel (!%p12_p2) target bundleno = 3 (0x3), region = 114 }
 0x124   :  { %762 = vsyncpa [#allocation4], 1 }
 0x125   :  { %764 = vsyncpa [#allocation4 + $0x1], 1 }

</bundles_post_ra>
